<compile_context>
chip_gen: v7x
topology: tpu7x:2x2x1
jax: 0.10.0
libtpu: 0.0.40
codegen_flags: <defaults>
</compile_context>

<pallas_src>
import functools

import jax
import jax.numpy as jnp
import numpy as np
from jax.experimental import pallas as pl
from jax.experimental.pallas import tpu as pltpu

BN_EPS = 1e-5


def _round_up(x, m):
    return ((x + m - 1) // m) * m


# ----------------------------------------------------------------------------------
# Single-step kernel: spatial mean -> matmul (BN-folded bf16 weights, f32 acc) -> +shift, ReLU
# ----------------------------------------------------------------------------------
def _aspp_pool_kernel(inv_hw, x_ref, w_ref, b_ref, o_ref):
    # x_ref: (B, Cin, HW) f32 -- adaptive average pool = mean over the lane (spatial) axis.
    pooled = (jnp.sum(x_ref[...], axis=-1) * inv_hw).astype(w_ref.dtype)     # (B, Cin)
    acc = jnp.dot(pooled, w_ref[...], preferred_element_type=jnp.float32)    # (B, Np)
    o_ref[...] = jnp.maximum(acc + b_ref[...], 0.0).astype(o_ref.dtype)      # BN shift + ReLU


# ----------------------------------------------------------------------------------
# HW-tiled kernel (only used when the full-HW x block would blow the VMEM budget):
# accumulate partial spatial sums, do the matmul + epilogue on the last step.
# ----------------------------------------------------------------------------------
def _aspp_pool_tiled_kernel(inv_hw, x_ref, w_ref, b_ref, o_ref, psum_ref):
    s = pl.program_id(0)

    @pl.when(s == 0)
    def _():
        psum_ref[...] = jnp.zeros_like(psum_ref)

    psum_ref[...] += jnp.sum(x_ref[...], axis=-1)                            # (B, Cin)

    @pl.when(s == pl.num_programs(0) - 1)
    def _():
        pooled = (psum_ref[...] * inv_hw).astype(w_ref.dtype)
        acc = jnp.dot(pooled, w_ref[...], preferred_element_type=jnp.float32)
        o_ref[...] = jnp.maximum(acc + b_ref[...], 0.0).astype(o_ref.dtype)


def aspp_pooling(x, w, gamma, beta, running_mean, running_var, eps=BN_EPS,
                 max_x_block_bytes=6 * 1024 * 1024):
    """_AsppPooling forward.  x: (B, Cin, H, W) NCHW; w: (Cin, Cout) 1x1-conv weight."""
    B, Cin, H, W = x.shape
    Cout = w.shape[1]
    HW = H * W
    inv_hw = 1.0 / float(HW)

    # Fold eval-mode BatchNorm into the conv weights (scale) and a per-channel shift.
    # NOTE: for stricter-than-bf16 accuracy keep the weights f32 here (doubles weight HBM).
    scale = (gamma / jnp.sqrt(running_var + eps)).astype(jnp.float32)
    shift = (beta - running_mean * scale).astype(jnp.float32)

    Np = _round_up(Cout, 128)                      # lane-dense output / MXU N tile
    wp = (w.astype(jnp.float32) * scale[None, :]).astype(jnp.bfloat16)
    if Np != Cout:
        wp = jnp.pad(wp, ((0, 0), (0, Np - Cout)))
        shift = jnp.pad(shift, (0, Np - Cout))
    shiftp = shift.reshape(1, Np)

    # Free reshape only -- no transpose / copy of x.
    x3 = x.reshape(B, Cin, HW)
    if x3.dtype != jnp.float32:
        x3 = x3.astype(jnp.float32)

    # Spatial tiling only when needed (sized so double-buffered x stays far below the
    # 32 MiB limit we set explicitly -- safe on v5e/v6e/v7x alike).
    bytes_per_col = B * Cin * 4
    max_cols = max(128, (max_x_block_bytes // max(bytes_per_col, 1)) // 128 * 128)
    if HW <= max_cols:
        thw, nhw = HW, 1
    else:
        thw = max_cols
        nhw = -(-HW // thw)
    HWp = thw * nhw
    if HWp != HW:
        x3 = jnp.pad(x3, ((0, 0), (0, 0), (0, HWp - HW)))   # zero pad is sum-neutral

    cparams = pltpu.CompilerParams(
        dimension_semantics=("arbitrary",),
        vmem_limit_bytes=32 * 1024 * 1024,
    )

    if nhw == 1:
        # Single grid step: no accumulator, no init/finalize, direct lane-dense store.
        y = pl.pallas_call(
            functools.partial(_aspp_pool_kernel, inv_hw),
            out_shape=jax.ShapeDtypeStruct((B, Np), jnp.float32),
            grid_spec=pltpu.PrefetchScalarGridSpec(
                num_scalar_prefetch=0,
                grid=(1,),
                in_specs=[
                    pl.BlockSpec((B, Cin, HWp), lambda s: (0, 0, 0)),
                    pl.BlockSpec((Cin, Np), lambda s: (0, 0)),
                    pl.BlockSpec((1, Np), lambda s: (0, 0)),
                ],
                out_specs=pl.BlockSpec((B, Np), lambda s: (0, 0)),
            ),
            compiler_params=cparams,
        )(x3, wp, shiftp)
    else:
        y = pl.pallas_call(
            functools.partial(_aspp_pool_tiled_kernel, inv_hw),
            out_shape=jax.ShapeDtypeStruct((B, Np), jnp.float32),
            grid_spec=pltpu.PrefetchScalarGridSpec(
                num_scalar_prefetch=0,
                grid=(nhw,),
                in_specs=[
                    pl.BlockSpec((B, Cin, thw), lambda s: (0, 0, s)),
                    pl.BlockSpec((Cin, Np), lambda s: (0, 0)),
                    pl.BlockSpec((1, Np), lambda s: (0, 0)),
                ],
                out_specs=pl.BlockSpec((B, Np), lambda s: (0, 0)),
                scratch_shapes=[pltpu.VMEM((B, Cin), jnp.float32)],
            ),
            compiler_params=cparams,
        )(x3, wp, shiftp)

    y = y[:, :Cout] if Np != Cout else y

    # F.interpolate of a 1x1 map with mode='bilinear', align_corners=True is exactly a
    # broadcast; left as jnp glue so it fuses into the consumer (ASPP concat).
    return jnp.broadcast_to(y[:, :, None, None], (B, Cout, H, W))


# ----------------------------------------------------------------------------------
# Pure-f32 reference (PyTorch eval-mode semantics).
# ----------------------------------------------------------------------------------
def reference(x, w, gamma, beta, running_mean, running_var, eps=BN_EPS):
    B, Cin, H, W = x.shape
    Cout = w.shape[1]
    pooled = jnp.mean(x.astype(jnp.float32), axis=(2, 3))                 # (B, Cin)
    conv = pooled @ w.astype(jnp.float32)                                 # (B, Cout)
    scale = gamma / jnp.sqrt(running_var + eps)
    shift = beta - running_mean * scale
    y = jnp.maximum(conv * scale + shift, 0.0)
    return jnp.broadcast_to(y[:, :, None, None], (B, Cout, H, W))


# ----------------------------------------------------------------------------------
if __name__ == "__main__":
    key = jax.random.PRNGKey(0)
    k_x, k_w, k_g, k_b, k_m, k_v = jax.random.split(key, 6)

    # Small shapes consistent with the module: _AsppPooling(32 -> 16) on a 16x16 map.
    B, Cin, Cout, H, W = 2, 32, 16, 16, 16

    x = jax.random.normal(k_x, (B, Cin, H, W), jnp.float32)
    w = jax.random.normal(k_w, (Cin, Cout), jnp.float32) / np.sqrt(Cin)
    gamma = 1.0 + 0.1 * jax.random.normal(k_g, (Cout,), jnp.float32)
    beta = 0.1 * jax.random.normal(k_b, (Cout,), jnp.float32)
    running_mean = 0.05 * jax.random.normal(k_m, (Cout,), jnp.float32)
    running_var = jnp.abs(1.0 + 0.1 * jax.random.normal(k_v, (Cout,), jnp.float32))

    ref = reference(x, w, gamma, beta, running_mean, running_var)

    # Path 1: single-grid-step kernel (native ASPP-head config lands here).
    out = jax.block_until_ready(
        jax.jit(aspp_pooling)(x, w, gamma, beta, running_mean, running_var))
    assert out.shape == (B, Cout, H, W)
    np.testing.assert_allclose(np.asarray(out), np.asarray(ref), rtol=1e-2, atol=1e-2)

    # Path 2: HW-tiled kernel (force a tiny x-block budget to exercise the spatial grid axis).
    fwd_tiled = jax.jit(functools.partial(aspp_pooling, max_x_block_bytes=32 * 1024))
    out_tiled = jax.block_until_ready(
        fwd_tiled(x, w, gamma, beta, running_mean, running_var))
    np.testing.assert_allclose(np.asarray(out_tiled), np.asarray(ref), rtol=1e-2, atol=1e-2)

    print("KERNEL_OK")
</pallas_src>

<mosaic_0001>
module attributes {stable_mosaic.version = 11 : i64} {
  func.func @_aspp_pool_kernel(%arg0: i32, %arg1: memref<2x32x256xf32, #tpu.memory_space<vmem>>, %arg2: memref<32x128xbf16, #tpu.memory_space<vmem>>, %arg3: memref<1x128xf32, #tpu.memory_space<vmem>>, %arg4: memref<2x128xf32, #tpu.memory_space<vmem>>) attributes {dimension_semantics = [#tpu.dimension_semantics<arbitrary>], iteration_bounds = array<i64: 1>, scalar_prefetch = 0 : i64, scratch_operands = 0 : i64, tpu.core_type = #tpu.core_type<tc>, window_params = [{pipeline_mode = #tpu.pipeline_mode<synchronous>, transform_indices = @transform_0, window_bounds = array<i64: 2, 32, 256>}, {pipeline_mode = #tpu.pipeline_mode<synchronous>, transform_indices = @transform_1, window_bounds = array<i64: 32, 128>}, {pipeline_mode = #tpu.pipeline_mode<synchronous>, transform_indices = @transform_2, window_bounds = array<i64: 1, 128>}, {pipeline_mode = #tpu.pipeline_mode<synchronous>, transform_indices = @transform_3, window_bounds = array<i64: 2, 128>}]} {
    %c0 = arith.constant 0 : index
    %c0_0 = arith.constant 0 : index
    %c0_1 = arith.constant 0 : index
    %0 = vector.load %arg1[%c0, %c0_0, %c0_1] : memref<2x32x256xf32, #tpu.memory_space<vmem>>, vector<2x32x256xf32>
    %cst = arith.constant dense<0.000000e+00> : vector<2x32xf32>
    %1 = vector.multi_reduction <add>, %0, %cst [2] : vector<2x32x256xf32> to vector<2x32xf32>
    %cst_2 = arith.constant 3.906250e-03 : f32
    %2 = vector.broadcast %cst_2 : f32 to vector<2x32xf32>
    %3 = arith.mulf %1, %2 : vector<2x32xf32>
    %4 = arith.truncf %3 : vector<2x32xf32> to vector<2x32xbf16>
    %c0_3 = arith.constant 0 : index
    %c0_4 = arith.constant 0 : index
    %5 = vector.load %arg2[%c0_3, %c0_4] : memref<32x128xbf16, #tpu.memory_space<vmem>>, vector<32x128xbf16>
    %cst_5 = arith.constant dense<0.000000e+00> : vector<2x128xf32>
    %6 = tpu.matmul %4, %5, %cst_5 {dimension_numbers = #tpu.dot_dimension_numbers<[1], [0], [0], [1], [0, 0, 1, 1], [], []>} : vector<2x32xbf16>, vector<32x128xbf16>, vector<2x128xf32> -> vector<2x128xf32>
    %c0_6 = arith.constant 0 : index
    %c0_7 = arith.constant 0 : index
    %7 = vector.load %arg3[%c0_6, %c0_7] : memref<1x128xf32, #tpu.memory_space<vmem>>, vector<1x128xf32>
    %8 = vector.broadcast %7 : vector<1x128xf32> to vector<2x128xf32>
    %9 = arith.addf %6, %8 : vector<2x128xf32>
    %cst_8 = arith.constant 0.000000e+00 : f32
    %10 = vector.broadcast %cst_8 : f32 to vector<2x128xf32>
    %11 = arith.maximumf %9, %10 : vector<2x128xf32>
    %c0_9 = arith.constant 0 : index
    %c0_10 = arith.constant 0 : index
    %12 = vector.load %arg4[%c0_9, %c0_10] : memref<2x128xf32, #tpu.memory_space<vmem>>, vector<2x128xf32>
    tpu.vector_store %arg4[%c0_9, %c0_10], %11 {strides = array<i32>} : memref<2x128xf32, #tpu.memory_space<vmem>>, vector<2x128xf32>,
    return
  }
  func.func @transform_0(%arg0: i32) -> (i32, i32, i32) {
    %c0_i32 = arith.constant 0 : i32
    %c0_i32_0 = arith.constant 0 : i32
    %c0_i32_1 = arith.constant 0 : i32
    %c0_i32_2 = arith.constant 0 : i32
    return %c0_i32, %c0_i32_0, %c0_i32_1 : i32, i32, i32
  }
  func.func @transform_1(%arg0: i32) -> (i32, i32) {
    %c0_i32 = arith.constant 0 : i32
    %c0_i32_0 = arith.constant 0 : i32
    %c0_i32_1 = arith.constant 0 : i32
    return %c0_i32, %c0_i32_0 : i32, i32
  }
  func.func @transform_2(%arg0: i32) -> (i32, i32) {
    %c0_i32 = arith.constant 0 : i32
    %c0_i32_0 = arith.constant 0 : i32
    %c0_i32_1 = arith.constant 0 : i32
    return %c0_i32, %c0_i32_0 : i32, i32
  }
  func.func @transform_3(%arg0: i32) -> (i32, i32) {
    %c0_i32 = arith.constant 0 : i32
    %c0_i32_0 = arith.constant 0 : i32
    %c0_i32_1 = arith.constant 0 : i32
    return %c0_i32, %c0_i32_0 : i32, i32
  }
}

</mosaic_0001>

<bundles_post_ra>
// kernel: aspp_pooling.1
= control target key start
LH: loop header
LB: loop body
LE: loop exit
PB: predicated region body
PF: predicated region fallthrough
CT: control target
= control target key end

     0   :  { %v220_v25 = vmov 0.0   ;;  %vm221_vm0 = vmmov 0   ;;  %v90_v27 = vlaneseq  ;;  %vm101_vm1 = vcmask 130112   ;;  %s302_s0 = inlined_call_operand.vmem [shape: f32[2,32,256], index: 0, kind: input, shape index: {}]   ;;  %s303_s1 = inlined_call_operand.vmem [shape: bf16[32,128], index: 1, kind: input, shape index: {}]   ;;  %s304_s2 = inlined_call_operand.vmem [shape: f32[1,128], index: 2, kind: input, shape index: {}]   ;;  %s305_s3 = inlined_call_operand.vmem [shape: f32[2,128], index: 3, kind: output, shape index: {}]  }
   0x1   :  { %v23_v0 = vld [vmem:[%s302_s0 + $0x40] sm:$0xff]  ;;  %v24_v1 = vld [vmem:[%s302_s0 + $0x48] sm:$0xff]  ;;  %v25_v5 = vld [vmem:[%s302_s0 + $0x50] sm:$0xff]  ;;  %208 = vmatprep.subr.bf16.mxu0 %v220_v25  ;;  %212 = vmatprep.mubr.msk.bf16.mxu0 %vm221_vm0, %v220_v25  ;;  %vm108_vm2 = vcmask 195712   ;;  %vm115_vm3 = vcmask 261312   ;;  %vm136_vm4 = vcmask 1041409  }
   0x2   :  { %v15_v2 = vld [vmem:[%s302_s0] sm:$0xff]  ;;  %v43_v3 = vadd.f32 %v24_v1, %v23_v0  ;;  %v16_v4 = vld [vmem:[%s302_s0 + $0x8] sm:$0xff]  ;;  %v26_v6 = vld [vmem:[%s302_s0 + $0x58] sm:$0xff]  ;;  %v91_v30 = vand.u32 127, %v90_v27  ;;  %v93_v35 = vshrl.u32 %v90_v27, 7  ;;  %vm151_vm5 = vcmask 261120  }
   0x3   :  { %v31_v7 = vadd.f32 %v16_v4, %v15_v2  ;;  %v17_v8 = vld [vmem:[%s302_s0 + $0x10] sm:$0xff]  ;;  %v18_v9 = vld [vmem:[%s302_s0 + $0x18] sm:$0xff]  ;;  %v46_v10 = vadd.f32 %v26_v6, %v25_v5  ;;  %v19_v14 = vld [vmem:[%s302_s0 + $0x20] sm:$0xff] }
   0x4   :  { %44 = vadd.xlane.f32.xlu1 %v43_v3  ;;  %v34_v11 = vadd.f32 %v18_v9, %v17_v8  ;;  %v21_v12 = vld [vmem:[%s302_s0 + $0x30] sm:$0xff]  ;;  %v22_v13 = vld [vmem:[%s302_s0 + $0x38] sm:$0xff]  ;;  %v20_v15 = vld [vmem:[%s302_s0 + $0x28] sm:$0xff]  ;;  %v96_v38 = vadd.s32 4294967288, %v91_v30  ;;  %v103_v41 = vadd.s32 4294967280, %v91_v30  ;;  %v94_v45 = vsub.s32 %v91_v30, %v93_v35 }
   0x5   :  { %32 = vadd.xlane.f32.xlu0 %v31_v7  ;;  %v40_v16 = vadd.f32 %v22_v13, %v21_v12  ;;  %v37_v17 = vadd.f32 %v20_v15, %v19_v14  ;;  %v29_v18 = vld [vmem:[%s302_s0 + $0x70] sm:$0xff]  ;;  %v30_v19 = vld [vmem:[%s302_s0 + $0x78] sm:$0xff]  ;;  %v27_v20 = vld [vmem:[%s302_s0 + $0x60] sm:$0xff]  ;;  %v110_v50 = vadd.s32 4294967272, %v91_v30 }
   0x6   :  { %v28_v21 = vld [vmem:[%s302_s0 + $0x68] sm:$0xff]  ;;  %v52_v22 = vadd.f32 %v30_v19, %v29_v18  ;;  %v218_v24 = vld [vmem:[%s303_s1] sm:$0xff]   ;;  %v99_v47 = vsub.s32 %v96_v38, %v93_v35  ;;  %v106_v51 = vsub.s32 %v103_v41, %v93_v35 }
   0x7   :  { %v49_v23 = vadd.f32 %v28_v21, %v27_v20  ;;  %209 = vmatpush3.bf16.msra.mxu0 %v218_v24  ;;  %v219_v26 = vld [vmem:[%s303_s1 + $0x8] sm:$0xff]   ;;  %v113_v62 = vsub.s32 %v110_v50, %v93_v35 }
   0x8   :  { %47 = vadd.xlane.f32.xlu1 %v46_v10  ;;  %210 = vmatprep.subr.bf16.mxu0 %v220_v25 }
   0x9   :  { %35 = vadd.xlane.f32.xlu0 %v34_v11 }
   0xb   :  { %211 = vmatpush3.bf16.msra.mxu0 %v219_v26 }
   0xc   :  { %41 = vadd.xlane.f32.xlu1 %v40_v16 }
   0xd   :  { %38 = vadd.xlane.f32.xlu0 %v37_v17  ;;  %v201_v17 = vld [vmem:[%s304_s2] ss:$0 sm:$0xff] }
  0x10   :  { %53 = vadd.xlane.f32.xlu1 %v52_v22 }
  0x11   :  { %50 = vadd.xlane.f32.xlu0 %v49_v23 }
  0x91   :  { %v45_v28 = vpop.xlane.xlu1 %44 }
  0x92   :  { %v33_v29 = vpop.xlane.xlu0 %32  ;;  %v59_v37 = vmul.f32 0.00390625, %v45_v28 }
  0x93   :  { %v55_v34 = vmul.f32 0.00390625, %v33_v29 }
  0x95   :  { %v48_v31 = vpop.xlane.xlu1 %47 }
  0x96   :  { %v60_v32 = vmul.f32 0.00390625, %v48_v31  ;;  %v36_v33 = vpop.xlane.xlu0 %35 }
  0x97   :  { %v56_v36 = vmul.f32 0.00390625, %v36_v33 }
  0x98   :  { %v65_v42 = vpack.c.bf16 %v60_v32, %v59_v37 }
  0x99   :  { %v63_v39 = vpack.c.bf16 %v56_v36, %v55_v34  ;;  %v42_v40 = vpop.xlane.xlu1 %41 }
  0x9a   :  { %v58_v43 = vmul.f32 0.00390625, %v42_v40  ;;  %v39_v44 = vpop.xlane.xlu0 %38  ;;  %v86_v54 = vunpack.c.l.b16 %v65_v42  ;;  %v87_v55 = vunpack.c.h.b16 %v65_v42 }
  0x9b   :  { %v57_v46 = vmul.f32 0.00390625, %v39_v44  ;;  %v82_v48 = vunpack.c.l.b16 %v63_v39  ;;  %v83_v49 = vunpack.c.h.b16 %v63_v39 }
  0x9c   :  { %v120_v2 = vrot.slane %v86_v54, %v94_v45  ;;  %v124_v3 = vrot.slane %v87_v55, %v99_v47 }
  0x9d   :  { %v64_v52 = vpack.c.bf16 %v58_v43, %v57_v46  ;;  %v54_v53 = vpop.xlane.xlu1 %53  ;;  %v95_v60 = vrot.slane %v82_v48, %v94_v45  ;;  %v100_v61 = vrot.slane %v83_v49, %v99_v47 }
  0x9e   :  { %v62_v56 = vmul.f32 0.00390625, %v54_v53  ;;  %v51_v57 = vpop.xlane.xlu0 %50  ;;  %v125_v11 = vsel %vm101_vm1, %v124_v3, %v120_v2 }
  0x9f   :  { %v84_v58 = vunpack.c.l.b16 %v64_v52  ;;  %v61_v59 = vmul.f32 0.00390625, %v51_v57  ;;  %v85_v63 = vunpack.c.h.b16 %v64_v52  ;;  %v102_v6 = vsel %vm101_vm1, %v100_v61, %v95_v60 }
  0xa1   :  { %v107_v0 = vrot.slane %v84_v58, %v106_v51  ;;  %v66_v1 = vpack.c.bf16 %v62_v56, %v61_v59  ;;  %v114_v7 = vrot.slane %v85_v63, %v113_v62 }
  0xa3   :  { %v88_v4 = vunpack.c.l.b16 %v66_v1  ;;  %v89_v5 = vunpack.c.h.b16 %v66_v1  ;;  %v109_v8 = vsel %vm108_vm2, %v107_v0, %v102_v6 }
  0xa4   :  { %v116_v13 = vsel %vm115_vm3, %v114_v7, %v109_v8 }
  0xa5   :  { %v129_v9 = vrot.slane %v88_v4, %v106_v51  ;;  %v134_v10 = vrot.slane %v89_v5, %v113_v62 }
  0xa7   :  { %v130_v12 = vsel %vm108_vm2, %v129_v9, %v125_v11 }
  0xa8   :  { %v135_v14 = vsel %vm115_vm3, %v134_v10, %v130_v12 }
  0xa9   :  { %v137_v15 = vsel %vm136_vm4, %v135_v14, %v116_v13 }
  0xaa   :  { %v138_v16 = vpack.c.b16 %v137_v15, %v137_v15 }
  0xac   :  { %213 = vmatmul.mubr.msk.bf16.vlgmr.msra.gmra.mrb[0].mxu0 %vm151_vm5, %v138_v16 }
 0x17f   :  { %v189_v18 = vpop.f32.mrb[0].mxu0 }
 0x180   :  { %v190_v19 = vadd.f32 %v201_v17, %v189_v18  ;;  %v214_v20 = vpop.f32.mrb[1].mxu0 }
 0x181   :  { %v192_v21 = vpop.f32.mrb[2].mxu0 }
 0x182   :  { %v195_v22 = vmax.f32 %v190_v19, 0.0  ;;  %v215_v23 = vpop.f32.mrb[3].mxu0 }
 0x184   :  { %196 = vst [vmem:[%s305_s3] sm:$0x3] %v195_v22 }

</bundles_post_ra>
